<compile_context>
chip_gen: v5e
topology: v5e:2x2
jax: 0.10.0
libtpu: 0.0.40
codegen_flags: <defaults>
</compile_context>

<pallas_src>
import functools

import jax
import jax.numpy as jnp
from jax.experimental import pallas as pl
from jax.experimental.pallas import tpu as pltpu


def _upsample_kernel(x_ref, w_ref, b_ref, a_ref, o_ref, *, TH, W, Cin, Cout):
    """One (batch, row-tile) grid step.

    x_ref: (1, H+2, W+2, Cin)  bf16 zero-padded NHWC image (VMEM-resident per n)
    w_ref: (9*Cin, Cout)       bf16 tap-major im2col weights (output channels
                               pre-permuted into pixel-shuffle (q, c) order)
    b_ref: (1, Cout)           f32 bias (same channel permutation)
    a_ref: (1,)                f32 PReLU alpha in SMEM (single shared scalar)
    o_ref: (1, TH, 2, W, 2*C)  f32 pixel-shuffled output rows, C = Cout // 4
    """
    C = Cout // 4
    t = pl.program_id(1)
    row0 = t * TH

    # Halo'd row slab for this tile.  Do the (small) im2col in f32 so the
    # unaligned sublane slices stay on the well-supported relayout path, then
    # cast the patches to bf16 so the matmul runs on the bf16 MXU.
    xs = x_ref[0, pl.ds(row0, TH + 2), :, :].astype(jnp.float32)   # (TH+2, W+2, Cin)

    slabs = []
    for dy in range(3):
        for dx in range(3):
            slabs.append(xs[dy:dy + TH, dx:dx + W, :])             # (TH, W, Cin)
    patches = jnp.concatenate(slabs, axis=-1)                      # (TH, W, 9*Cin)
    patches = patches.reshape(TH * W, 9 * Cin).astype(jnp.bfloat16)

    # Single MXU call with K = 9*Cin, f32 accumulation.
    acc = jnp.dot(patches, w_ref[...], preferred_element_type=jnp.float32)

    # Bias + PReLU (single shared alpha -> commutes with PixelShuffle), f32.
    y = acc + b_ref[0, :]
    alpha = a_ref[0]
    y = jnp.where(y > 0, y, alpha * y)
    y = y.reshape(TH, W, Cout)

    # Fused PixelShuffle(2): channels are ordered q*C + c with q = 2*i + j, so
    # output row-offset i is the contiguous channel slab [2*i*C, 2*i*C + 2*C).
    for i in range(2):
        o_ref[0, :, i, :, :] = y[:, :, 2 * i * C:2 * i * C + 2 * C].astype(o_ref.dtype)


def _pick_tile_h(H, W, Cout):
    """Rows per output tile: biggest divisor of H under a small VMEM budget,
    but keep >= 2 row tiles when H is large enough so the grid can pipeline."""
    budget = 4 * 1024 * 1024            # f32 acc + out block per grid step
    best = 1
    for th in range(1, H + 1):
        if H % th == 0 and th * W * Cout * 4 * 3 <= budget:
            best = th
    if best == H and H >= 16:
        for th in range(H // 2, 0, -1):
            if H % th == 0:
                best = th
                break
    return best


def upsample_block(x_nchw, weight, bias, alpha, *, tile_h=None):
    """x_nchw: (N, Cin, H, W); weight: (Cout, Cin, 3, 3) PyTorch OIHW layout;
    bias: (Cout,); alpha: scalar PReLU parameter.
    Returns (N, Cout // 4, 2H, 2W), matching PyTorch UpsampleBlock."""
    N, Cin, H, W = x_nchw.shape
    Cout = weight.shape[0]
    assert Cout % 4 == 0, "PixelShuffle(2) needs Cout divisible by 4"
    C = Cout // 4

    TH = _pick_tile_h(H, W, Cout) if tile_h is None else tile_h
    assert H % TH == 0

    # NCHW -> NHWC in bf16, zero-pad by 1 ('same' for a 3x3 kernel).
    x = jnp.transpose(x_nchw, (0, 2, 3, 1)).astype(jnp.bfloat16)
    x_pad = jnp.pad(x, ((0, 0), (1, 1), (1, 1), (0, 0)))
    # TODO(synk): for stacked SRGAN upsample blocks, expose an NHWC entry point
    # so the NCHW<->NHWC transposes don't run once per block.

    # Permute conv output channels so post-conv channel p = q*C + c maps to the
    # original channel c*4 + q (q = 2*i + j is the pixel-shuffle quadrant).
    perm = jnp.asarray([c * 4 + q for q in range(4) for c in range(C)], jnp.int32)
    w_perm = weight[perm]                                    # (Cout, Cin, 3, 3)
    b_perm = bias[perm]
    # (Cout, Cin, 3, 3) -> (3, 3, Cin, Cout) -> (9*Cin, Cout), tap-major rows
    # matching the in-kernel im2col concat order (dy-major, then dx, then cin).
    w_flat = jnp.transpose(w_perm, (2, 3, 1, 0)).reshape(9 * Cin, Cout)
    w_flat = w_flat.astype(jnp.bfloat16)
    b2 = b_perm.reshape(1, Cout).astype(jnp.float32)
    a1 = jnp.asarray(alpha, jnp.float32).reshape(1)

    kernel = functools.partial(_upsample_kernel, TH=TH, W=W, Cin=Cin, Cout=Cout)

    out = pl.pallas_call(
        kernel,
        out_shape=jax.ShapeDtypeStruct((N, H, 2, W, 2 * C), jnp.float32),
        grid_spec=pltpu.PrefetchScalarGridSpec(
            num_scalar_prefetch=0,
            grid=(N, H // TH),
            in_specs=[
                # Whole padded image per n; block index independent of t so it
                # stays VMEM-resident across the row-tile axis (no re-DMA).
                pl.BlockSpec((1, H + 2, W + 2, Cin), lambda n, t: (n, 0, 0, 0)),
                pl.BlockSpec((9 * Cin, Cout), lambda n, t: (0, 0)),
                pl.BlockSpec((1, Cout), lambda n, t: (0, 0)),
                # PReLU alpha: scalar path (SMEM), not a padded VMEM tile.
                pl.BlockSpec(memory_space=pltpu.MemorySpace.SMEM),
            ],
            out_specs=pl.BlockSpec((1, TH, 2, W, 2 * C),
                                   lambda n, t: (n, t, 0, 0, 0)),
        ),
        compiler_params=pltpu.CompilerParams(
            dimension_semantics=("parallel", "parallel"),
            vmem_limit_bytes=32 * 1024 * 1024,
        ),
    )(x_pad, w_flat, b2, a1)

    # (N, H, 2, W, 2C) -> (N, 2H, 2W, C) is a contiguous (free) reshape; then a
    # single NHWC -> NCHW transpose — the only post-kernel HBM pass.
    y = out.reshape(N, 2 * H, 2 * W, C)
    return jnp.transpose(y, (0, 3, 1, 2))


def _reference(x_nchw, weight, bias, alpha):
    """Plain-JAX reference (lax conv + PixelShuffle + PReLU).  Inputs are
    rounded through bf16 to match the kernel's MXU input precision."""
    xb = x_nchw.astype(jnp.bfloat16).astype(jnp.float32)
    wb = weight.astype(jnp.bfloat16).astype(jnp.float32)
    y = jax.lax.conv_general_dilated(
        xb, wb, window_strides=(1, 1), padding="SAME",
        dimension_numbers=("NCHW", "OIHW", "NCHW"),
        precision=jax.lax.Precision.HIGHEST)
    y = y + bias.reshape(1, -1, 1, 1).astype(jnp.float32)
    N, Cout, H, W = y.shape
    r = 2
    C = Cout // (r * r)
    y = y.reshape(N, C, r, r, H, W)
    y = jnp.transpose(y, (0, 1, 4, 2, 5, 3)).reshape(N, C, H * r, W * r)
    return jnp.where(y > 0, y, alpha * y)


if __name__ == "__main__":
    key = jax.random.PRNGKey(0)
    kx, kw, kb = jax.random.split(key, 3)

    N, Cin, H, W = 2, 4, 16, 16
    Cout = 16                       # must be divisible by 4 for PixelShuffle(2)

    x = jax.random.normal(kx, (N, Cin, H, W), dtype=jnp.float32)
    weight = jax.random.normal(kw, (Cout, Cin, 3, 3), dtype=jnp.float32) * 0.1
    bias = jax.random.normal(kb, (Cout,), dtype=jnp.float32) * 0.1
    alpha = 0.25                    # nn.PReLU() default init

    out = jax.block_until_ready(upsample_block(x, weight, bias, alpha))
    ref = _reference(x, weight, bias, alpha)

    assert out.shape == (N, Cout // 4, 2 * H, 2 * W), out.shape
    assert jnp.allclose(out, ref, atol=1e-2, rtol=1e-2), "mismatch vs reference"

    print("KERNEL_OK")
</pallas_src>

<mosaic_0001>
module attributes {stable_mosaic.version = 11 : i64} {
  func.func @_upsample_kernel(%arg0: i32, %arg1: i32, %arg2: memref<1x18x18x4xbf16, #tpu.memory_space<vmem>>, %arg3: memref<36x16xbf16, #tpu.memory_space<vmem>>, %arg4: memref<1x16xf32, #tpu.memory_space<vmem>>, %arg5: memref<1xf32, #tpu.memory_space<smem>>, %arg6: memref<1x8x2x16x8xf32, #tpu.memory_space<vmem>>) attributes {dimension_semantics = [#tpu.dimension_semantics<parallel>, #tpu.dimension_semantics<parallel>], iteration_bounds = array<i64: 2, 2>, scalar_prefetch = 0 : i64, scratch_operands = 0 : i64, tpu.core_type = #tpu.core_type<tc>, window_params = [{transform_indices = @transform_0, window_bounds = array<i64: 1, 18, 18, 4>}, {pipeline_mode = #tpu.pipeline_mode<synchronous>, transform_indices = @transform_1, window_bounds = array<i64: 36, 16>}, {pipeline_mode = #tpu.pipeline_mode<synchronous>, transform_indices = @transform_2, window_bounds = array<i64: 1, 16>}, {transform_indices = @transform_3, window_bounds = array<i64: 1>}, {transform_indices = @transform_4, window_bounds = array<i64: 1, 8, 2, 16, 8>}]} {
    %c8_i32 = arith.constant 8 : i32
    %0 = arith.muli %arg1, %c8_i32 : i32
    %c0 = arith.constant 0 : index
    %1 = arith.index_cast %0 : i32 to index
    %c0_0 = arith.constant 0 : index
    %c0_1 = arith.constant 0 : index
    %2 = vector.load %arg2[%c0, %1, %c0_0, %c0_1] : memref<1x18x18x4xbf16, #tpu.memory_space<vmem>>, vector<1x10x18x4xbf16>
    %3 = vector.shape_cast %2 : vector<1x10x18x4xbf16> to vector<10x18x4xbf16>
    %4 = arith.extf %3 : vector<10x18x4xbf16> to vector<10x18x4xf32>
    %5 = vector.extract_strided_slice %4 {offsets = [0, 0, 0], sizes = [8, 16, 4], strides = [1, 1, 1]} : vector<10x18x4xf32> to vector<8x16x4xf32>
    %6 = vector.extract_strided_slice %4 {offsets = [0, 1, 0], sizes = [8, 16, 4], strides = [1, 1, 1]} : vector<10x18x4xf32> to vector<8x16x4xf32>
    %7 = vector.extract_strided_slice %4 {offsets = [0, 2, 0], sizes = [8, 16, 4], strides = [1, 1, 1]} : vector<10x18x4xf32> to vector<8x16x4xf32>
    %8 = vector.extract_strided_slice %4 {offsets = [1, 0, 0], sizes = [8, 16, 4], strides = [1, 1, 1]} : vector<10x18x4xf32> to vector<8x16x4xf32>
    %9 = vector.extract_strided_slice %4 {offsets = [1, 1, 0], sizes = [8, 16, 4], strides = [1, 1, 1]} : vector<10x18x4xf32> to vector<8x16x4xf32>
    %10 = vector.extract_strided_slice %4 {offsets = [1, 2, 0], sizes = [8, 16, 4], strides = [1, 1, 1]} : vector<10x18x4xf32> to vector<8x16x4xf32>
    %11 = vector.extract_strided_slice %4 {offsets = [2, 0, 0], sizes = [8, 16, 4], strides = [1, 1, 1]} : vector<10x18x4xf32> to vector<8x16x4xf32>
    %12 = vector.extract_strided_slice %4 {offsets = [2, 1, 0], sizes = [8, 16, 4], strides = [1, 1, 1]} : vector<10x18x4xf32> to vector<8x16x4xf32>
    %13 = vector.extract_strided_slice %4 {offsets = [2, 2, 0], sizes = [8, 16, 4], strides = [1, 1, 1]} : vector<10x18x4xf32> to vector<8x16x4xf32>
    %14 = tpu.concatenate %5, %6, %7, %8, %9, %10, %11, %12, %13 in 2 : vector<8x16x4xf32>, vector<8x16x4xf32>, vector<8x16x4xf32>, vector<8x16x4xf32>, vector<8x16x4xf32>, vector<8x16x4xf32>, vector<8x16x4xf32>, vector<8x16x4xf32>, vector<8x16x4xf32> -> vector<8x16x36xf32>
    %15 = vector.shape_cast %14 : vector<8x16x36xf32> to vector<128x36xf32>
    %16 = arith.truncf %15 : vector<128x36xf32> to vector<128x36xbf16>
    %c0_2 = arith.constant 0 : index
    %c0_3 = arith.constant 0 : index
    %17 = vector.load %arg3[%c0_2, %c0_3] : memref<36x16xbf16, #tpu.memory_space<vmem>>, vector<36x16xbf16>
    %cst = arith.constant dense<0.000000e+00> : vector<128x16xf32>
    %18 = tpu.matmul %16, %17, %cst {dimension_numbers = #tpu.dot_dimension_numbers<[1], [0], [0], [1], [0, 0, 1, 1], [], []>} : vector<128x36xbf16>, vector<36x16xbf16>, vector<128x16xf32> -> vector<128x16xf32>
    %c0_4 = arith.constant 0 : index
    %c0_5 = arith.constant 0 : index
    %19 = vector.load %arg4[%c0_4, %c0_5] : memref<1x16xf32, #tpu.memory_space<vmem>>, vector<1x16xf32>
    %20 = vector.shape_cast %19 : vector<1x16xf32> to vector<16xf32>
    %21 = vector.shape_cast %20 : vector<16xf32> to vector<1x16xf32>
    %22 = vector.broadcast %21 : vector<1x16xf32> to vector<128x16xf32>
    %23 = arith.addf %18, %22 : vector<128x16xf32>
    %c0_6 = arith.constant 0 : index
    %24 = memref.load %arg5[%c0_6] : memref<1xf32, #tpu.memory_space<smem>>
    %cst_7 = arith.constant 0.000000e+00 : f32
    %25 = vector.broadcast %cst_7 : f32 to vector<128x16xf32>
    %26 = arith.cmpf ogt, %23, %25 : vector<128x16xf32>
    %27 = vector.broadcast %24 : f32 to vector<128x16xf32>
    %28 = arith.mulf %27, %23 : vector<128x16xf32>
    %29 = arith.select %26, %23, %28 : vector<128x16xi1>, vector<128x16xf32>
    %30 = vector.shape_cast %29 : vector<128x16xf32> to vector<8x16x16xf32>
    %31 = vector.extract_strided_slice %30 {offsets = [0, 0, 0], sizes = [8, 16, 8], strides = [1, 1, 1]} : vector<8x16x16xf32> to vector<8x16x8xf32>
    %c0_8 = arith.constant 0 : index
    %c0_9 = arith.constant 0 : index
    %c0_10 = arith.constant 0 : index
    %c0_11 = arith.constant 0 : index
    %c0_12 = arith.constant 0 : index
    %32 = vector.load %arg6[%c0_8, %c0_9, %c0_10, %c0_11, %c0_12] : memref<1x8x2x16x8xf32, #tpu.memory_space<vmem>>, vector<1x8x1x16x8xf32>
    %33 = vector.shape_cast %32 : vector<1x8x1x16x8xf32> to vector<8x16x8xf32>
    %34 = vector.shape_cast %31 : vector<8x16x8xf32> to vector<1x8x1x16x8xf32>
    tpu.vector_store %arg6[%c0_8, %c0_9, %c0_10, %c0_11, %c0_12], %34 {strides = array<i32>} : memref<1x8x2x16x8xf32, #tpu.memory_space<vmem>>, vector<1x8x1x16x8xf32>,
    %35 = vector.extract_strided_slice %30 {offsets = [0, 0, 8], sizes = [8, 16, 8], strides = [1, 1, 1]} : vector<8x16x16xf32> to vector<8x16x8xf32>
    %c0_13 = arith.constant 0 : index
    %c0_14 = arith.constant 0 : index
    %c1 = arith.constant 1 : index
    %c0_15 = arith.constant 0 : index
    %c0_16 = arith.constant 0 : index
    %36 = vector.load %arg6[%c0_13, %c0_14, %c1, %c0_15, %c0_16] : memref<1x8x2x16x8xf32, #tpu.memory_space<vmem>>, vector<1x8x1x16x8xf32>
    %37 = vector.shape_cast %36 : vector<1x8x1x16x8xf32> to vector<8x16x8xf32>
    %38 = vector.shape_cast %35 : vector<8x16x8xf32> to vector<1x8x1x16x8xf32>
    tpu.vector_store %arg6[%c0_13, %c0_14, %c1, %c0_15, %c0_16], %38 {strides = array<i32>} : memref<1x8x2x16x8xf32, #tpu.memory_space<vmem>>, vector<1x8x1x16x8xf32>,
    return
  }
  func.func @transform_0(%arg0: i32, %arg1: i32) -> (i32, i32, i32, i32) {
    %c0_i32 = arith.constant 0 : i32
    %c0_i32_0 = arith.constant 0 : i32
    %c0_i32_1 = arith.constant 0 : i32
    %c0_i32_2 = arith.constant 0 : i32
    return %arg0, %c0_i32, %c0_i32_0, %c0_i32_1 : i32, i32, i32, i32
  }
  func.func @transform_1(%arg0: i32, %arg1: i32) -> (i32, i32) {
    %c0_i32 = arith.constant 0 : i32
    %c0_i32_0 = arith.constant 0 : i32
    %c0_i32_1 = arith.constant 0 : i32
    return %c0_i32, %c0_i32_0 : i32, i32
  }
  func.func @transform_2(%arg0: i32, %arg1: i32) -> (i32, i32) {
    %c0_i32 = arith.constant 0 : i32
    %c0_i32_0 = arith.constant 0 : i32
    %c0_i32_1 = arith.constant 0 : i32
    return %c0_i32, %c0_i32_0 : i32, i32
  }
  func.func @transform_3(%arg0: i32, %arg1: i32) -> i32 {
    %c0_i32 = arith.constant 0 : i32
    %c0_i32_0 = arith.constant 0 : i32
    return %c0_i32 : i32
  }
  func.func @transform_4(%arg0: i32, %arg1: i32) -> (i32, i32, i32, i32, i32) {
    %c0_i32 = arith.constant 0 : i32
    %c0_i32_0 = arith.constant 0 : i32
    %c0_i32_1 = arith.constant 0 : i32
    %c0_i32_2 = arith.constant 0 : i32
    return %arg0, %arg1, %c0_i32, %c0_i32_0, %c0_i32_1 : i32, i32, i32, i32, i32
  }
}

</mosaic_0001>

<bundles_post_ra>
// kernel: tpu_custom_call.1
= control target key start
LH: loop header
LB: loop body
LE: loop exit
PB: predicated region body
PF: predicated region fallthrough
CT: control target
= control target key end

     0   :  { %s1821_s17 = smov 0   ;;  %s1823_s18 = smov 0   ;;  %s2591_s0 = inlined_call_operand.vmem [shape: bf16[2,18,18,4], index: 0, kind: input, shape index: {}]   ;;  %s2592_s1 = inlined_call_operand.vmem [shape: bf16[36,16], index: 1, kind: input, shape index: {}]   ;;  %s2593_s2 = inlined_call_operand.vmem [shape: f32[1,16], index: 2, kind: input, shape index: {}]   ;;  %s2594_s3 = inlined_call_operand.<no memory space> [shape: f32[1], index: 3, kind: input, shape index: {}]   ;;  %s2595_s4 = inlined_call_operand.vmem [shape: f32[2,16,2,16,8], index: 4, kind: output, shape index: {}]  }
   0x1   :  { %9 = sst [smem:[#allocation2]] %s2594_s3  ;;  %s1825_s19 = smov 0  }
   0x2   :  { %s1827_s20 = smov 0   ;;  %s1829_s21 = smov 0  }
   0x3 LB: > { %s24_s3 = sadd.s32 1, %s1774_s19  ;;  %s27_s22 = sadd.s32 1, %s1778_s20  ;;  %s1782_s21 = sphi %s1829_s21, %s15_s21   ;;  %s1778_s20 = sphi %s1827_s20, %s2599_s20   ;;  %s1774_s19 = sphi %s1825_s19, %s2598_s19   ;;  %s1770_s18 = sphi %s1823_s18, %s2597_s18   ;;  %s1766_s17 = sphi %s1821_s17, %s2596_s17  }
   0x4   : > { %p25_p0 = scmp.ge.s32.totalorder %s24_s3, 2  ;;  %p1294_p1 = scmp.ge.s32.totalorder %s1782_s21, 1 }
   0x5   : > { %p177_p2 = scmp.lt.s32.totalorder %s1782_s21, 5 }
   0x6   : > { %s2601_s3 = smov (%p25_p0, %s24_s3), 0  ;;  %s2603_s22 = smov (!%p25_p0, %s27_s22), %s1778_s20 }
   0x7   : > { %p178_p3 = pnand %p1294_p1, %p177_p2  ;;  %p29_p4 = scmp.ge.s32.totalorder %s2603_s22, 2 }
   0x8   : > { %p208_p5 = scmp.lt.s32.totalorder (!%p178_p3), %s1770_s18, 1  ;;  %s1337_s23 = smul.u32 (!%p178_p3), 96, %s1766_s17 }
   0x9   : > { %s2605_s22 = smov (%p29_p4, %s2603_s22), 0  ;;  %181 = sbr.rel (%p178_p3) target bundleno = 581 (0x245), region = 36 }
   0xa   : > { %s1784_s29 = smov (!%p178_p3), 4   ;;  %s1785_s30 = smov (!%p178_p3), 8  }
   0xb   : > { %s1786_s5 = smov (!%p178_p3), 12   ;;  %s1787_s6 = smov (!%p178_p3), 16  }
   0xc   : > { %s1788_s7 = smov (!%p178_p3), 20   ;;  %s1789_s8 = smov (!%p178_p3), 24  }
   0xd   : > { %s1790_s9 = smov (!%p178_p3), 32   ;;  %s1791_s10 = smov (!%p178_p3), 28  }
   0xe   : > { %s2607_s18 = smov (!%p208_p5, %s1770_s18), 1  ;;  %vm313_vm0 = vcmask 1046528   ;;  %vm402_vm1 = vcmask 1045504   ;;  %vm805_vm2 = vcmask 31744   ;;  %vm822_vm3 = vcmask 64512  }
   0xf   : > { %s1373_s24 = smul.u32 216, %s2607_s18  ;;  %vm839_vm4 = vcmask 97280   ;;  %vm998_vm5 = vcmask 1041408   ;;  %vm856_vm6 = vcmask 130048   ;;  %vm873_vm7 = vcmask 162816   ;;  %s1298_s26 = sshll.u32 %s2607_s18, 6 }
  0x10   : > { %vm890_vm8 = vcmask 195584   ;;  %vm907_vm9 = vcmask 228352   ;;  %vm924_vm10 = vcmask 261120   ;;  %vm973_vm11 = vcmask 293888   ;;  %s1792_s18 = smov 120  }
  0x11   : > { %s212_s27 = scalar_lea.vmem %s2591_s0, %s1373_s24  ;;  %s1051_s24 = sld [smem:[#allocation2]] }
  0x12   : > { %s1860_s28 = scalar_lea.vmem %s212_s27, %s1337_s23  ;;  %s1296_s23 = sshll.u32 %s1766_s17, 3 }
  0x13   : > { %v1361_v0 = vld [vmem:[%s1860_s28 + $0x30] sm:$0xff]   ;;  %v1864_v1 = vld [vmem:[%s1860_s28 + $0x38] sm:$0x1]  ;;  %v1875_v7 = vld [vmem:[%s1860_s28 + $0x20] sm:$0x1]  ;;  %p216_p6 = scmp.lt.s32.totalorder %s1296_s23, 15 }
  0x14   : > { %v1360_v2 = vld [vmem:[%s1860_s28 + $0x18] sm:$0xff]   ;;  %v1867_v3 = vunpack.c.l.bf16 %v1361_v0  ;;  %v1869_v4 = vunpack.c.h.bf16 %v1361_v0  ;;  %v273_v5 = vunpack.c.l.bf16 %v1864_v1  ;;  %v1341_v8 = vld [vmem:[%s1860_s28] sm:$0xff]   ;;  %v1879_v9 = vld [vmem:[%s1860_s28 + $0x8] sm:$0x1]  ;;  %v267_v11 = vunpack.c.l.bf16 %v1875_v7 }
  0x15   : > { %v1872_v6 = vunpack.c.l.bf16 %v1360_v2  ;;  %v1881_v10 = vunpack.c.h.bf16 %v1360_v2  ;;  %v1884_v12 = vunpack.c.l.bf16 %v1341_v8  ;;  %v1886_v13 = vunpack.c.h.bf16 %v1341_v8  ;;  %v244_v14 = vld [vmem:[%s1860_s28 + $0x3c] sm:$0xff]   ;;  %v1900_v23 = vld [vmem:[%s1860_s28 + $0x44] sm:$0x1]  ;;  %v1913_v33 = vld [vmem:[%s1860_s28 + $0x2c] sm:$0x1]  ;;  %s2609_s23 = smov (!%p216_p6, %s1296_s23), 15 }
  0x16   : > { %v334_v15 = vrot.slane %v1867_v3, 1  ;;  %v335_v16 = vrot.slane %v1869_v4, 1  ;;  %v337_v17 = vrot.slane %v273_v5, 1  ;;  %v327_v20 = vrot.slane %v267_v11, 1  ;;  %v238_v28 = vld [vmem:[%s1860_s28 + $0x24] sm:$0xff]   ;;  %v232_v38 = vld [vmem:[%s1860_s28 + $0xc] sm:$0xff]  }
  0x17   : > { %v324_v18 = vrot.slane %v1872_v6, 1  ;;  %v325_v19 = vrot.slane %v1881_v10, 1  ;;  %v261_v21 = vunpack.c.l.bf16 %v1879_v9  ;;  %v314_v22 = vrot.slane %v1884_v12, 1  ;;  %v1931_v43 = vld [vmem:[%s1860_s28 + $0x14] sm:$0x1]  ;;  %v1362_v8 = vld [vmem:[%s1860_s28 + $0x48] sm:$0xff]  }
  0x18   : > { %v336_v24 = vsel %vm313_vm0, %v334_v15, %v335_v16  ;;  %v338_v25 = vsel %vm313_vm0, %v335_v16, %v337_v17  ;;  %v315_v26 = vrot.slane %v1886_v13, 1  ;;  %v1905_v27 = vunpack.c.l.bf16 %v244_v14  ;;  %v250_v52 = vld [vmem:[%s1860_s28 + $0x54] sm:$0xff]   ;;  %v1951_v57 = vld [vmem:[%s1860_s28 + $0x5c] sm:$0x1]  ;;  %v249_v17 = vld [vmem:[%s1860_s28 + $0x50] sm:$0x1] }
  0x19   : > { %v1908_v29 = vpack.i.bf16 %v338_v25, %v336_v24  ;;  %v326_v30 = vsel %vm313_vm0, %v324_v18, %v325_v19  ;;  %v328_v31 = vsel %vm313_vm0, %v325_v19, %v327_v20  ;;  %v317_v32 = vrot.slane %v261_v21, 1  ;;  %s1297_s25 = sshll.u32 %s2609_s23, 2 }
  0x1a   : > { %v1915_v34 = vpack.i.bf16 %v328_v31, %v326_v30  ;;  %v316_v35 = vsel %vm313_vm0, %v314_v22, %v315_v26  ;;  %v1918_v36 = vunpack.c.h.bf16 %v244_v14  ;;  %v276_v37 = vunpack.c.l.bf16 %v1900_v23  ;;  %s220_s27 = sadd.s32 %s1298_s26, %s1297_s25 }
  0x1b   : > { %1444 = vrot.lane.b32.xlu2 %v1908_v29, %s1784_s29  ;;  %v318_v39 = vsel %vm313_vm0, %v315_v26, %v317_v32  ;;  %v339_v40 = vrot.slane %v1905_v27, 1  ;;  %v1926_v41 = vunpack.c.l.bf16 %v238_v28  ;;  %v1928_v42 = vunpack.c.h.bf16 %v238_v28 }
  0x1c   : > { %1434 = vrot.lane.b32.xlu1 %v1915_v34, %s1784_s29  ;;  %v1423_v44 = vpack.i.bf16 %v318_v39, %v316_v35  ;;  %v340_v45 = vrot.slane %v1918_v36, 1  ;;  %v342_v46 = vrot.slane %v276_v37, 1  ;;  %v270_v47 = vunpack.c.l.bf16 %v1913_v33 }
  0x1d   : > { %v329_v48 = vrot.slane %v1926_v41, 1  ;;  %v330_v49 = vrot.slane %v1928_v42, 1  ;;  %v1941_v50 = vunpack.c.l.bf16 %v232_v38  ;;  %v1943_v51 = vunpack.c.h.bf16 %v232_v38 }
  0x1e   : > { %1424 = vrot.lane.b32.xlu0 %v1423_v44, %s1784_s29  ;;  %v341_v53 = vsel %vm313_vm0, %v339_v40, %v340_v45  ;;  %v343_v54 = vsel %vm313_vm0, %v340_v45, %v342_v46  ;;  %v332_v55 = vrot.slane %v270_v47, 1  ;;  %v264_v56 = vunpack.c.l.bf16 %v1931_v43 }
  0x1f   : > { %v1953_v58 = vpack.i.bf16 %v343_v54, %v341_v53  ;;  %v331_v59 = vsel %vm313_vm0, %v329_v48, %v330_v49  ;;  %v319_v60 = vrot.slane %v1941_v50, 1  ;;  %v320_v61 = vrot.slane %v1943_v51, 1 }
  0x20   : > { %v333_v62 = vsel %vm313_vm0, %v330_v49, %v332_v55  ;;  %v322_v63 = vrot.slane %v264_v56, 1  ;;  %v1959_v0 = vunpack.c.l.bf16 %v250_v52  ;;  %v1961_v2 = vunpack.c.h.bf16 %v250_v52 }
  0x21   : > { %v1964_v9 = vpack.i.bf16 %v333_v62, %v331_v59  ;;  %v321_v14 = vsel %vm313_vm0, %v319_v60, %v320_v61  ;;  %v282_v15 = vunpack.c.l.bf16 %v1951_v57  ;;  %v403_v16 = vrot.slane %v1884_v12, 2 }
  0x22   : > { %v323_v18 = vsel %vm313_vm0, %v320_v61, %v322_v63  ;;  %v349_v19 = vrot.slane %v1959_v0, 1  ;;  %v350_v20 = vrot.slane %v1961_v2, 1  ;;  %v404_v22 = vrot.slane %v1886_v13, 2 }
  0x23   : > { %1449 = vrot.lane.b32.xlu2 %v1953_v58, %s1784_s29  ;;  %v1976_v24 = vpack.i.bf16 %v323_v18, %v321_v14  ;;  %v352_v25 = vrot.slane %v282_v15, 1  ;;  %v406_v26 = vrot.slane %v261_v21, 2  ;;  %v1980_v28 = vunpack.c.l.bf16 %v1362_v8 }
  0x24   : > { %1439 = vrot.lane.b32.xlu1 %v1964_v9, %s1784_s29  ;;  %v351_v30 = vsel %vm313_vm0, %v349_v19, %v350_v20  ;;  %v405_v31 = vsel %vm402_vm1, %v403_v16, %v404_v22  ;;  %v1986_v32 = vunpack.c.h.bf16 %v1362_v8  ;;  %v279_v33 = vunpack.c.l.bf16 %v249_v17 }
  0x25   : > { %v353_v35 = vsel %vm313_vm0, %v350_v20, %v352_v25  ;;  %v407_v38 = vsel %vm402_vm1, %v404_v22, %v406_v26  ;;  %v344_v39 = vrot.slane %v1980_v28, 1  ;;  %v418_v45 = vrot.slane %v1926_v41, 2 }
  0x26   : > { %1429 = vrot.lane.b32.xlu0 %v1976_v24, %s1784_s29  ;;  %v345_v21 = vrot.slane %v1986_v32, 1  ;;  %v347_v40 = vrot.slane %v279_v33, 1  ;;  %v1994_v43 = vpack.i.bf16 %v353_v35, %v351_v30  ;;  %v1463_v44 = vpack.i.bf16 %v407_v38, %v405_v31 }
  0x27   : > { %v419_v49 = vrot.slane %v1928_v42, 2  ;;  %v421_v52 = vrot.slane %v270_v47, 2  ;;  %v413_v53 = vrot.slane %v1872_v6, 2  ;;  %v414_v54 = vrot.slane %v1881_v10, 2 }
  0x28   : > { %v346_v46 = vsel %vm313_vm0, %v344_v39, %v345_v21  ;;  %v348_v48 = vsel %vm313_vm0, %v345_v21, %v347_v40  ;;  %v416_v55 = vrot.slane %v267_v11, 2  ;;  %v408_v60 = vrot.slane %v1941_v50, 2 }
  0x29   : > { %v2004_v59 = vpack.i.bf16 %v348_v48, %v346_v46  ;;  %v409_v61 = vrot.slane %v1943_v51, 2  ;;  %v411_v62 = vrot.slane %v264_v56, 2  ;;  %v420_v47 = vsel %vm402_vm1, %v418_v45, %v419_v49 }
  0x2a   : > { %v422_v63 = vsel %vm402_vm1, %v419_v49, %v421_v52  ;;  %v415_v7 = vsel %vm402_vm1, %v413_v53, %v414_v54  ;;  %v417_v11 = vsel %vm402_vm1, %v414_v54, %v416_v55  ;;  %v433_v17 = vrot.slane %v1980_v28, 2  ;;  %v1363_v55 = vld [vmem:[%s1860_s28 + $0x60] sm:$0xff]  }
  0x2b   : > { %1464 = vrot.lane.b32.xlu2 %v1463_v44, %s1785_s30  ;;  %v2017_v8 = vpack.i.bf16 %v422_v63, %v420_v47  ;;  %v410_v14 = vsel %vm402_vm1, %v408_v60, %v409_v61  ;;  %v412_v56 = vsel %vm402_vm1, %v409_v61, %v411_v62  ;;  %v2021_v16 = vpack.i.bf16 %v417_v11, %v415_v7  ;;  %v255_v11 = vld [vmem:[%s1860_s28 + $0x68] sm:$0x1] }
  0x2c   : > { %1459 = vrot.lane.b32.xlu1 %v1994_v43, %s1784_s29  ;;  %v434_v18 = vrot.slane %v1986_v32, 2  ;;  %v436_v19 = vrot.slane %v279_v33, 2  ;;  %v428_v20 = vrot.slane %v1905_v27, 2  ;;  %v429_v22 = vrot.slane %v1918_v36, 2 }
  0x2d   : > { %v431_v25 = vrot.slane %v276_v37, 2  ;;  %v2029_v26 = vpack.i.bf16 %v412_v56, %v410_v14  ;;  %v423_v30 = vrot.slane %v1867_v3, 2  ;;  %v424_v31 = vrot.slane %v1869_v4, 2 }
  0x2e   : > { %1454 = vrot.lane.b32.xlu0 %v2004_v59, %s1784_s29  ;;  %v426_v35 = vrot.slane %v273_v5, 2  ;;  %v435_v33 = vsel %vm402_vm1, %v433_v17, %v434_v18  ;;  %v437_v23 = vsel %vm402_vm1, %v434_v18, %v436_v19  ;;  %v430_v37 = vsel %vm402_vm1, %v428_v20, %v429_v22 }
  0x2f   : > { %v432_v38 = vsel %vm402_vm1, %v429_v22, %v431_v25  ;;  %v2045_v39 = vpack.i.bf16 %v437_v23, %v435_v33  ;;  %v425_v21 = vsel %vm402_vm1, %v423_v30, %v424_v31  ;;  %v438_v44 = vrot.slane %v1959_v0, 2 }
  0x30   : > { %v427_v1 = vsel %vm402_vm1, %v424_v31, %v426_v35  ;;  %v2049_v5 = vpack.i.bf16 %v432_v38, %v430_v37  ;;  %v439_v45 = vrot.slane %v1961_v2, 2  ;;  %v441_v46 = vrot.slane %v282_v15, 2 }
  0x31   : > { %v2051_v40 = vpack.i.bf16 %v427_v1, %v425_v21  ;;  %v2065_v48 = vpack.i.bf16 %v1881_v10, %v1872_v6  ;;  %v1503_v53 = vpack.i.bf16 %v1943_v51, %v1941_v50  ;;  %v2078_v57 = vpack.i.bf16 %v1918_v36, %v1905_v27 }
  0x32   : > { %v440_v49 = vsel %vm402_vm1, %v438_v44, %v439_v45  ;;  %v442_v52 = vsel %vm402_vm1, %v439_v45, %v441_v46  ;;  %v1518_v15 = vpack.i.bf16 %v1869_v4, %v1867_v3  ;;  %v2085_v60 = vpack.i.bf16 %v1928_v42, %v1926_v41  ;;  %v256_v46 = vld [vmem:[%s1860_s28 + $0x6c] sm:$0xff]  }
  0x33   : > { %1479 = vrot.lane.b32.xlu2 %v2017_v8, %s1785_s30  ;;  %v2071_v54 = vpack.i.bf16 %v442_v52, %v440_v49  ;;  %v1358_v61 = vunpack.c.l.bf16 %v1363_v55  ;;  %v1359_v62 = vunpack.c.h.bf16 %v1363_v55  ;;  %v2091_v63 = vpack.i.bf16 %v1961_v2, %v1959_v0  ;;  %v258_v52 = vld [vmem:[%s1860_s28 + $0x74] sm:$0x1] }
  0x34   : > { %1474 = vrot.lane.b32.xlu1 %v2021_v16, %s1785_s30  ;;  %v1528_v7 = vpack.i.bf16 %v1986_v32, %v1980_v28  ;;  %v285_v14 = vunpack.c.l.bf16 %v255_v11  ;;  %v288_v55 = vunpack.c.l.bf16 %v258_v52 }
  0x35   : > { %v1538_v47 = vpack.i.bf16 %v1359_v62, %v1358_v61  ;;  %v542_v56 = vrot.slane %v1358_v61, 1  ;;  %v543_v17 = vrot.slane %v1359_v62, 1  ;;  %v595_v25 = vrot.slane %v1358_v61, 2 }
  0x36   : > { %1469 = vrot.lane.b32.xlu0 %v2029_v26, %s1785_s30  ;;  %v545_v18 = vrot.slane %v285_v14, 1  ;;  %v596_v30 = vrot.slane %v1359_v62, 2  ;;  %v598_v31 = vrot.slane %v285_v14, 2 }
  0x37   : > { %v544_v19 = vsel %vm313_vm0, %v542_v56, %v543_v17 }
  0x38   : > { %v546_v20 = vsel %vm313_vm0, %v543_v17, %v545_v18  ;;  %v597_v33 = vsel %vm402_vm1, %v595_v25, %v596_v30  ;;  %v599_v23 = vsel %vm402_vm1, %v596_v30, %v598_v31 }
  0x39   : > { %v1578_v22 = vpack.i.bf16 %v546_v20, %v544_v19  ;;  %v1618_v37 = vpack.i.bf16 %v599_v23, %v597_v33  ;;  %v702_v19 = vrot.slane %v288_v55, 1 }
  0x3b   : > { %1494 = vrot.lane.b32.xlu2 %v2045_v39, %s1785_s30 }
  0x3c   : > { %1489 = vrot.lane.b32.xlu1 %v2049_v5, %s1785_s30 }
  0x3e   : > { %1484 = vrot.lane.b32.xlu0 %v2051_v40, %s1785_s30 }
  0x43   : > { %1509 = vrot.lane.b32.xlu2 %v2065_v48, %s1786_s5 }
  0x44   : > { %1504 = vrot.lane.b32.xlu1 %v1503_v53, %s1786_s5 }
  0x46   : > { %1499 = vrot.lane.b32.xlu0 %v2071_v54, %s1785_s30  ;;  %s1299_s30 = sshll.u32 %s220_s27, 3 }
  0x47   : > { %s2459_s17 = scalar_lea.vmem %s2595_s4, %s1299_s30 }
  0x4b   : > { %1524 = vrot.lane.b32.xlu2 %v2078_v57, %s1786_s5 }
  0x4c   : > { %1519 = vrot.lane.b32.xlu1 %v1518_v15, %s1786_s5 }
  0x4e   : > { %1514 = vrot.lane.b32.xlu0 %v2085_v60, %s1786_s5 }
  0x53   : > { %1539 = vrot.lane.b32.xlu2 %v1538_v47, %s1786_s5 }
  0x54   : > { %1534 = vrot.lane.b32.xlu1 %v2091_v63, %s1786_s5 }
  0x56   : > { %1529 = vrot.lane.b32.xlu0 %v1528_v7, %s1786_s5 }
  0x5b   : > { %1554 = vrot.lane.b32.xlu2 %v1964_v9, %s1787_s6 }
  0x5c   : > { %1549 = vrot.lane.b32.xlu1 %v1915_v34, %s1787_s6 }
  0x5e   : > { %1544 = vrot.lane.b32.xlu0 %v1976_v24, %s1787_s6 }
  0x63   : > { %1569 = vrot.lane.b32.xlu2 %v2004_v59, %s1787_s6 }
  0x64   : > { %1564 = vrot.lane.b32.xlu1 %v1953_v58, %s1787_s6 }
  0x66   : > { %1559 = vrot.lane.b32.xlu0 %v1908_v29, %s1787_s6 }
  0x6b   : > { %1584 = vrot.lane.b32.xlu2 %v2049_v5, %s1788_s7 }
  0x6c   : > { %1579 = vrot.lane.b32.xlu1 %v1578_v22, %s1787_s6 }
  0x6e   : > { %1574 = vrot.lane.b32.xlu0 %v1994_v43, %s1787_s6 }
  0x73   : > { %1599 = vrot.lane.b32.xlu2 %v1538_v47, %s1789_s8 }
  0x74   : > { %1594 = vrot.lane.b32.xlu1 %v1528_v7, %s1789_s8 }
  0x75   : > { %v2110_v24 = vpop.permute.xlu2 %1444 }
  0x76   : > { %1589 = vrot.lane.b32.xlu0 %v2071_v54, %s1788_s7 }
  0x7b   : > { %1614 = vrot.lane.b32.xlu2 %v2045_v39, %s1790_s9 }
  0x7c   : > { %1609 = vrot.lane.b32.xlu1 %v1578_v22, %s1791_s10 }
  0x7d   : > { %v2117_v35 = vpop.permute.xlu2 %1449 }
  0x7e   : > { %1604 = vrot.lane.b32.xlu0 %v2004_v59, %s1791_s10 }
  0x83   : > { %1629 = vrot.lane.b32.xlu2 %v2017_v8, %s1788_s7 }
  0x84   : > { %1624 = vrot.lane.b32.xlu1 %v2029_v26, %s1788_s7 }
  0x85   : > { %v1465_v38 = vpop.permute.xlu2 %1464 }
  0x86   : > { %1619 = vrot.lane.b32.xlu0 %v1618_v37, %s1790_s9  ;;  %v1467_v1 = vunpack.i.h.bf16 %v1465_v38  ;;  %v1466_v44 = vunpack.i.l.bf16 %v1465_v38 }
  0x8b   : > { %1644 = vrot.lane.b32.xlu2 %v1915_v34, %s1791_s10 }
  0x8c   : > { %1639 = vrot.lane.b32.xlu1 %v1518_v15, %s1789_s8  ;;  %v287_v15 = vunpack.c.h.bf16 %v256_v46 }
  0x8d   : > { %v1480_v59 = vpop.permute.xlu2 %1479 }
  0x8e   : > { %1634 = vrot.lane.b32.xlu0 %v2065_v48, %s1789_s8  ;;  %v2133_v21 = vpop.permute.xlu1 %1434  ;;  %v286_v48 = vunpack.c.l.bf16 %v256_v46  ;;  %v1481_v7 = vunpack.i.l.bf16 %v1480_v59  ;;  %v700_v18 = vrot.slane %v287_v15, 1 }
  0x90   : > { %v1425_v45 = vpop.permute.xlu0 %1424  ;;  %v699_v17 = vrot.slane %v286_v48, 1 }
  0x91   : > { %v1427_v26 = vunpack.i.h.bf16 %v1425_v45  ;;  %v1426_v49 = vunpack.i.l.bf16 %v1425_v45  ;;  %v755_v45 = vrot.slane %v288_v55, 2  ;;  %v1437_v55 = vunpack.i.h.bf16 %v2133_v21 }
  0x93   : > { %v807_v34 = vsel %vm805_vm2, %v1886_v13, %v1427_v26  ;;  %v806_v53 = vsel %vm805_vm2, %v1884_v12, %v1426_v49  ;;  %1659 = vrot.lane.b32.xlu2 %v2051_v40, %s1790_s9  ;;  %v1482_v13 = vunpack.i.h.bf16 %v1480_v59 }
  0x94   : > { %1654 = vrot.lane.b32.xlu1 %v2021_v16, %s1790_s9  ;;  %v2146_v61 = vsel %vm822_vm3, %v806_v53, %v1466_v44  ;;  %v2149_v62 = vsel %vm822_vm3, %v807_v34, %v1467_v1  ;;  %v753_v44 = vrot.slane %v287_v15, 2 }
  0x95   : > { %v1495_v47 = vpop.permute.xlu2 %1494 }
  0x96   : > { %1649 = vrot.lane.b32.xlu0 %v1908_v29, %s1791_s10  ;;  %v1440_v12 = vpop.permute.xlu1 %1439  ;;  %v1496_v46 = vunpack.i.l.bf16 %v1495_v47  ;;  %v756_v53 = vsel %vm402_vm1, %v753_v44, %v755_v45 }
  0x97   : > { %v1442_v11 = vunpack.i.h.bf16 %v1440_v12  ;;  %v1441_v14 = vunpack.i.l.bf16 %v1440_v12 }
  0x98   : > { %v1430_v56 = vpop.permute.xlu0 %1429 }
  0x99   : > { %v813_v20 = vsel %vm805_vm2, %v1928_v42, %v1442_v11  ;;  %v812_v22 = vsel %vm805_vm2, %v1926_v41, %v1441_v14  ;;  %v1432_v25 = vunpack.i.h.bf16 %v1430_v56  ;;  %v1431_v30 = vunpack.i.l.bf16 %v1430_v56 }
  0x9a   : > { %v2158_v31 = vsel %vm822_vm3, %v812_v22, %v1481_v7  ;;  %v2161_v29 = vsel %vm822_vm3, %v813_v20, %v1482_v13  ;;  %v701_v41 = vsel %vm313_vm0, %v699_v17, %v700_v18  ;;  %v703_v42 = vsel %vm313_vm0, %v700_v18, %v702_v19 }
  0x9b   : > { %v809_v33 = vsel %vm805_vm2, %v1943_v51, %v1432_v25  ;;  %v808_v23 = vsel %vm805_vm2, %v1941_v50, %v1431_v30  ;;  %1674 = vrot.lane.b32.xlu2 %v2091_v63, %s1789_s8  ;;  %v1688_v1 = vpack.i.bf16 %v703_v42, %v701_v41  ;;  %v752_v51 = vrot.slane %v286_v48, 2 }
  0x9c   : > { %1669 = vrot.lane.b32.xlu1 %v1618_v37, %s1788_s7  ;;  %v1497_v50 = vunpack.i.h.bf16 %v1495_v47  ;;  %v1678_v37 = vpack.i.bf16 %v287_v15, %v286_v48  ;;  %v1436_v47 = vunpack.i.l.bf16 %v2133_v21  ;;  %v811_v21 = vsel %vm805_vm2, %v1881_v10, %v1437_v55 }
  0x9d   : > { %v1510_v38 = vpop.permute.xlu2 %1509  ;;  %v1452_v10 = vunpack.i.h.bf16 %v2117_v35 }
  0x9e   : > { %1664 = vrot.lane.b32.xlu0 %v2045_v39, %s1788_s7  ;;  %v2174_v59 = vpop.permute.xlu1 %1459  ;;  %v754_v39 = vsel %vm402_vm1, %v752_v51, %v753_v44  ;;  %v1512_v11 = vunpack.i.h.bf16 %v1510_v38  ;;  %v1511_v14 = vunpack.i.l.bf16 %v1510_v38 }
  0x9f   : > { %v1698_v12 = vpack.i.bf16 %v756_v53, %v754_v39  ;;  %v1461_v45 = vunpack.i.l.bf16 %v2174_v59 }
  0xa0   : > { %v1455_v26 = vpop.permute.xlu0 %1454 }
  0xa1   : > { %v1457_v63 = vunpack.i.h.bf16 %v1455_v26  ;;  %v1456_v49 = vunpack.i.l.bf16 %v1455_v26 }
  0xa3   : > { %v819_v52 = vsel %vm805_vm2, %v1986_v32, %v1457_v63  ;;  %v818_v34 = vsel %vm805_vm2, %v1980_v28, %v1456_v49  ;;  %1689 = vrot.lane.b32.xlu2 %v1688_v1, %s1791_s10 }
  0xa4   : > { %1684 = vrot.lane.b32.xlu1 %v1994_v43, %s1791_s10  ;;  %v2188_v48 = vsel %vm822_vm3, %v818_v34, %v1496_v46  ;;  %v2191_v32 = vsel %vm822_vm3, %v819_v52, %v1497_v50  ;;  %v810_v43 = vsel %vm805_vm2, %v1872_v6, %v1436_v47  ;;  %v1451_v6 = vunpack.i.l.bf16 %v2117_v35 }
  0xa5   : > { %v2193_v28 = vpop.permute.xlu2 %1524  ;;  %v820_v52 = vsel %vm805_vm2, %v1959_v0, %v1461_v45 }
  0xa6   : > { %1679 = vrot.lane.b32.xlu0 %v1678_v37, %s1789_s8  ;;  %v1475_v15 = vpop.permute.xlu1 %1474  ;;  %v816_v35 = vsel %vm805_vm2, %v1905_v27, %v1451_v6 }
  0xa7   : > { %v1477_v13 = vunpack.i.h.bf16 %v1475_v15  ;;  %v1476_v7 = vunpack.i.l.bf16 %v1475_v15 }
  0xa8   : > { %v1470_v56 = vpop.permute.xlu0 %1469 }
  0xa9   : > { %v827_v17 = vsel %vm822_vm3, %v810_v43, %v1476_v7  ;;  %v828_v18 = vsel %vm822_vm3, %v811_v21, %v1477_v13  ;;  %v1472_v19 = vunpack.i.h.bf16 %v1470_v56  ;;  %v1471_v20 = vunpack.i.l.bf16 %v1470_v56 }
  0xab   : > { %v825_v22 = vsel %vm822_vm3, %v808_v23, %v1471_v20  ;;  %v826_v25 = vsel %vm822_vm3, %v809_v33, %v1472_v19  ;;  %1704 = vrot.lane.b32.xlu2 %v2021_v16, %s1788_s7  ;;  %v817_v16 = vsel %vm805_vm2, %v1918_v36, %v1452_v10  ;;  %v1339_v10 = vld [vmem:[%s2592_s1 + $0x8] sm:$0xff] }
  0xac   : > { %1699 = vrot.lane.b32.xlu1 %v1698_v12, %s1790_s9  ;;  %v2210_v30 = vsel %vm839_vm4, %v825_v22, %v1511_v14  ;;  %v2213_v41 = vsel %vm839_vm4, %v826_v25, %v1512_v11 }
  0xad   : > { %v1540_v42 = vpop.permute.xlu2 %1539 }
  0xae   : > { %1694 = vrot.lane.b32.xlu0 %v2071_v54, %s1790_s9  ;;  %v1490_v33 = vpop.permute.xlu1 %1489  ;;  %v1462_v54 = vunpack.i.h.bf16 %v2174_v59  ;;  %v1542_v26 = vunpack.i.h.bf16 %v1540_v42  ;;  %v1541_v63 = vunpack.i.l.bf16 %v1540_v42 }
  0xaf   : > { %v1492_v23 = vunpack.i.h.bf16 %v1490_v33  ;;  %v1491_v38 = vunpack.i.l.bf16 %v1490_v33 }
  0xb0   : > { %v2221_v1 = vpop.permute.xlu0 %1484 }
  0xb1   : > { %v834_v51 = vsel %vm822_vm3, %v817_v16, %v1492_v23  ;;  %v833_v44 = vsel %vm822_vm3, %v816_v35, %v1491_v38  ;;  %v1338_v35 = vld [vmem:[%s2592_s1] sm:$0xff] }
  0xb3   : > { %1719 = vrot.lane.b32.xlu2 %v2078_v57, %s1789_s8 }
  0xb4   : > { %1714 = vrot.lane.b32.xlu1 %v2085_v60, %s1789_s8 }
  0xb5   : > { %v2233_v46 = vpop.permute.xlu2 %1554 }
  0xb6   : > { %1709 = vrot.lane.b32.xlu0 %v2051_v40, %s1788_s7  ;;  %v1505_v27 = vpop.permute.xlu1 %1504  ;;  %v821_v40 = vsel %vm805_vm2, %v1961_v2, %v1462_v54 }
  0xb7   : > { %v1507_v36 = vunpack.i.h.bf16 %v1505_v27  ;;  %v1506_v50 = vunpack.i.l.bf16 %v1505_v27 }
  0xb8   : > { %v1500_v49 = vpop.permute.xlu0 %1499 }
  0xb9   : > { %v2237_v57 = vsel %vm839_vm4, %v2146_v61, %v1506_v50  ;;  %v2241_v60 = vsel %vm839_vm4, %v2149_v62, %v1507_v36  ;;  %v1502_v59 = vunpack.i.h.bf16 %v1500_v49  ;;  %v1501_v37 = vunpack.i.l.bf16 %v1500_v49 }
  0xba   : > { %v1446_v49 = vunpack.i.l.bf16 %v2110_v24 }
  0xbb   : > { %v838_v34 = vsel %vm822_vm3, %v821_v40, %v1502_v59  ;;  %v837_v39 = vsel %vm822_vm3, %v820_v52, %v1501_v37  ;;  %1734 = vrot.lane.b32.xlu2 %v2017_v8, %s1790_s9  ;;  %v1487_v59 = vunpack.i.h.bf16 %v2221_v1  ;;  %v1486_v37 = vunpack.i.l.bf16 %v2221_v1 }
  0xbc   : > { %1729 = vrot.lane.b32.xlu1 %v1953_v58, %s1791_s10  ;;  %v2254_v61 = vsel %vm839_vm4, %v837_v39, %v1541_v63  ;;  %v2257_v62 = vsel %vm839_vm4, %v838_v34, %v1542_v26  ;;  %v1447_v63 = vunpack.i.h.bf16 %v2110_v24  ;;  %v814_v34 = vsel %vm805_vm2, %v1867_v3, %v1446_v49 }
  0xbd   : > { %v1570_v58 = vpop.permute.xlu2 %1569  ;;  %v1527_v39 = vunpack.i.h.bf16 %v2193_v28  ;;  %v831_v24 = vsel %vm822_vm3, %v814_v34, %v1486_v37 }
  0xbe   : > { %1724 = vrot.lane.b32.xlu0 %v1964_v9, %s1791_s10  ;;  %v1520_v0 = vpop.permute.xlu1 %1519  ;;  %v1571_v43 = vunpack.i.l.bf16 %v1570_v58  ;;  %v815_v52 = vsel %vm805_vm2, %v1869_v4, %v1447_v63 }
  0xbf   : > { %v1522_v2 = vunpack.i.h.bf16 %v1520_v0  ;;  %v1521_v53 = vunpack.i.l.bf16 %v1520_v0  ;;  %v1526_v0 = vunpack.i.l.bf16 %v2193_v28 }
  0xc0   : > { %v1515_v55 = vpop.permute.xlu0 %1514 }
  0xc1   : > { %v846_v47 = vsel %vm839_vm4, %v2158_v31, %v1521_v53  ;;  %v847_v8 = vsel %vm839_vm4, %v2161_v29, %v1522_v2  ;;  %v1517_v15 = vunpack.i.h.bf16 %v1515_v55  ;;  %v1516_v13 = vunpack.i.l.bf16 %v1515_v55  ;;  %v953_v31 = vld [vmem:[%s2592_s1 + $0x10] sm:$0x3] }
  0xc2   : > { %v967_v21 = vunpack.c.l.b16 %v953_v31  ;;  %v1572_v29 = vunpack.i.h.bf16 %v1570_v58  ;;  %v832_v53 = vsel %vm822_vm3, %v815_v52, %v1487_v59  ;;  %v848_v58 = vsel %vm839_vm4, %v831_v24, %v1526_v0 }
  0xc3   : > { %v2266_v7 = vsel %vm839_vm4, %v828_v18, %v1517_v15  ;;  %v2269_v12 = vsel %vm839_vm4, %v827_v17, %v1516_v13  ;;  %v849_v3 = vsel %vm839_vm4, %v832_v53, %v1527_v39 }
  0xc4   : > { %v970_v18 = vpack.c.b16 %v967_v21, %v967_v21 }
  0xc5   : > { %v2278_v19 = vpop.permute.xlu2 %1584 }
  0xc6   : > { %1739 = vrot.lane.b32.xlu0 %v2049_v5, %s1790_s9  ;;  %v2273_v9 = vpop.permute.xlu1 %1534  ;;  %v1000_v20 = vsel %vm998_vm5, %v970_v18, 0  ;;  %v1587_v1 = vunpack.i.h.bf16 %v2278_v19  ;;  %v1586_v4 = vunpack.i.l.bf16 %v2278_v19 }
  0xc7   : > { %1365 = vmatpush.bf16.msra.mxu2 %v1000_v20  ;;  %1366 = vmatpush.bf16.msra.mxu3 %v1000_v20 }
  0xc8   : > { %v1530_v11 = vpop.permute.xlu0 %1529  ;;  %1007 = vmatpush.bf16.msra.mxu0 %v1000_v20  ;;  %1364 = vmatpush.bf16.msra.mxu1 %v1000_v20 }
  0xc9   : > { %v1532_v14 = vunpack.i.h.bf16 %v1530_v11  ;;  %v1531_v56 = vunpack.i.l.bf16 %v1530_v11 }
  0xcb   : > { %v851_v17 = vsel %vm839_vm4, %v834_v51, %v1532_v14  ;;  %v850_v5 = vsel %vm839_vm4, %v833_v44, %v1531_v56  ;;  %1368 = vmatpush.bf16.msra.mxu2 %v1339_v10  ;;  %1369 = vmatpush.bf16.msra.mxu3 %v1339_v10 }
  0xcc   : > { %v2283_v22 = vsel %vm856_vm6, %v850_v5, %v1571_v43  ;;  %v2286_v25 = vsel %vm856_vm6, %v851_v17, %v1572_v29  ;;  %1008 = vmatpush.bf16.msra.mxu0 %v1339_v10  ;;  %1367 = vmatpush.bf16.msra.mxu1 %v1339_v10  ;;  %v1537_v29 = vunpack.i.h.bf16 %v2273_v9  ;;  %v1536_v43 = vunpack.i.l.bf16 %v2273_v9 }
  0xcd   : > { %v2304_v51 = vpop.permute.xlu2 %1599 }
  0xce   : > { %v1550_v6 = vpop.permute.xlu1 %1549  ;;  %v852_v9 = vsel %vm839_vm4, %v2188_v48, %v1536_v43  ;;  %v1601_v49 = vunpack.i.l.bf16 %v2304_v51 }
  0xcf   : > { %v1552_v42 = vunpack.i.h.bf16 %v1550_v6  ;;  %v1551_v33 = vunpack.i.l.bf16 %v1550_v6  ;;  %1371 = vmatpush.bf16.msra.mxu2 %v1338_v35  ;;  %1372 = vmatpush.bf16.msra.mxu3 %v1338_v35 }
  0xd0   : > { %v2291_v23 = vpop.permute.xlu0 %1544  ;;  %1009 = vmatpush.bf16.msra.mxu0 %v1338_v35  ;;  %1370 = vmatpush.bf16.msra.mxu1 %v1338_v35 }
  0xd1   : > { %v2295_v38 = vsel %vm856_vm6, %v2210_v30, %v1551_v33  ;;  %v2299_v16 = vsel %vm856_vm6, %v2213_v41, %v1552_v42 }
  0xd5   : > { %v1615_v50 = vpop.permute.xlu2 %1614 }
  0xd6   : > { %v1565_v44 = vpop.permute.xlu1 %1564  ;;  %v1617_v11 = vunpack.i.h.bf16 %v1615_v50  ;;  %v1616_v14 = vunpack.i.l.bf16 %v1615_v50  ;;  %v1602_v50 = vunpack.i.h.bf16 %v2304_v51 }
  0xd7   : > { %v1567_v55 = vunpack.i.h.bf16 %v1565_v44 }
  0xd8   : > { %v1560_v30 = vpop.permute.xlu0 %1559 }
  0xd9   : > { %v1562_v54 = vunpack.i.h.bf16 %v1560_v30  ;;  %v1561_v45 = vunpack.i.l.bf16 %v1560_v30  ;;  %v866_v28 = vsel %vm856_vm6, %v849_v3, %v1567_v55 }
  0xda   : > { %v883_v18 = vsel %vm873_vm7, %v866_v28, %v1587_v1  ;;  %v1547_v28 = vunpack.i.h.bf16 %v2291_v23 }
  0xdb   : > { %v2307_v41 = vsel %vm856_vm6, %v847_v8, %v1562_v54  ;;  %v2310_v27 = vsel %vm856_vm6, %v846_v47, %v1561_v45  ;;  %v1566_v47 = vunpack.i.l.bf16 %v1565_v44  ;;  %v853_v44 = vsel %vm839_vm4, %v2191_v32, %v1537_v29 }
  0xdd   : > { %v2326_v8 = vpop.permute.xlu2 %1629  ;;  %v865_v15 = vsel %vm856_vm6, %v848_v58, %v1566_v47 }
  0xde   : > { %v2312_v36 = vpop.permute.xlu1 %1579  ;;  %v882_v56 = vsel %vm873_vm7, %v865_v15, %v1586_v4 }
  0xe0   : > { %v1575_v26 = vpop.permute.xlu0 %1574 }
  0xe1   : > { %v1577_v17 = vunpack.i.h.bf16 %v1575_v26  ;;  %v1576_v5 = vunpack.i.l.bf16 %v1575_v26 }
  0xe3   : > { %v869_v48 = vsel %vm856_vm6, %v852_v9, %v1576_v5  ;;  %v870_v59 = vsel %vm856_vm6, %v853_v44, %v1577_v17  ;;  %v1632_v17 = vunpack.i.h.bf16 %v2326_v8  ;;  %v1631_v5 = vunpack.i.l.bf16 %v2326_v8 }
  0xe5   : > { %v2344_v30 = vpop.permute.xlu2 %1644 }
  0xe6   : > { %v1595_v40 = vpop.permute.xlu1 %1594 }
  0xe7   : > { %v1597_v13 = vunpack.i.h.bf16 %v1595_v40  ;;  %v1596_v31 = vunpack.i.l.bf16 %v1595_v40 }
  0xe8   : > { %v1590_v2 = vpop.permute.xlu0 %1589 }
  0xe9   : > { %v899_v6 = vsel %vm890_vm8, %v882_v56, %v1596_v31  ;;  %v900_v42 = vsel %vm890_vm8, %v883_v18, %v1597_v13  ;;  %v1592_v33 = vunpack.i.h.bf16 %v1590_v2  ;;  %v1591_v35 = vunpack.i.l.bf16 %v1590_v2 }
  0xea   : > { %v1546_v13 = vunpack.i.l.bf16 %v2291_v23  ;;  %v1556_v56 = vunpack.i.l.bf16 %v2233_v46  ;;  %v1647_v23 = vunpack.i.h.bf16 %v2344_v30 }
  0xeb   : > { %v886_v37 = vsel %vm873_vm7, %v869_v48, %v1591_v35  ;;  %v887_v40 = vsel %vm873_vm7, %v870_v59, %v1592_v33 }
  0xec   : > { %v903_v2 = vsel %vm890_vm8, %v886_v37, %v1601_v49  ;;  %v904_v53 = vsel %vm890_vm8, %v887_v40, %v1602_v50  ;;  %v857_v18 = vsel %vm856_vm6, %v2237_v57, %v1546_v13  ;;  %v861_v57 = vsel %vm856_vm6, %v2269_v12, %v1556_v56 }
  0xed   : > { %v1660_v3 = vpop.permute.xlu2 %1659  ;;  %v878_v9 = vsel %vm873_vm7, %v861_v57, %v1631_v5 }
  0xee   : > { %v1610_v21 = vpop.permute.xlu1 %1609  ;;  %v1662_v50 = vunpack.i.h.bf16 %v1660_v3 }
  0xef   : > { %v1612_v52 = vunpack.i.h.bf16 %v1610_v21  ;;  %v1611_v34 = vunpack.i.l.bf16 %v1610_v21 }
  0xf0   : > { %v1605_v19 = vpop.permute.xlu0 %1604 }
  0xf1   : > { %v1607_v20 = vunpack.i.h.bf16 %v1605_v19  ;;  %v1606_v10 = vunpack.i.l.bf16 %v1605_v19  ;;  %v920_v55 = vsel %vm907_vm9, %v903_v2, %v1611_v34  ;;  %v921_v47 = vsel %vm907_vm9, %v904_v53, %v1612_v52 }
  0xf2   : > { %v858_v19 = vsel %vm856_vm6, %v2241_v60, %v1547_v28 }
  0xf3   : > { %v916_v54 = vsel %vm907_vm9, %v899_v6, %v1606_v10  ;;  %v917_v45 = vsel %vm907_vm9, %v900_v42, %v1607_v20  ;;  %v1646_v20 = vunpack.i.l.bf16 %v2344_v30 }
  0xf4   : > { %v933_v26 = vsel %vm924_vm10, %v916_v54, %v1616_v14  ;;  %v934_v63 = vsel %vm924_vm10, %v917_v45, %v1617_v11  ;;  %v1557_v14 = vunpack.i.h.bf16 %v2233_v46 }
  0xf5   : > { %v945_v32 = vpack.c.bf16 %v934_v63, %v933_v26  ;;  %v1675_v30 = vpop.permute.xlu2 %1674  ;;  %v1661_v26 = vunpack.i.l.bf16 %v1660_v3 }
  0xf6   : > { %v1625_v39 = vpop.permute.xlu1 %1624  ;;  %v862_v60 = vsel %vm856_vm6, %v2266_v7, %v1557_v14  ;;  %v1676_v14 = vunpack.i.l.bf16 %v1675_v30 }
  0xf7   : > { %1315 = vmatmul.msk.bf16.vlgmr.msra.gmra.mxu2 %vm973_vm11, %v945_v32  ;;  %v1627_v31 = vunpack.i.h.bf16 %v1625_v39  ;;  %v1626_v21 = vunpack.i.l.bf16 %v1625_v39  ;;  %v879_v44 = vsel %vm873_vm7, %v862_v60, %v1632_v17 }
  0xf8   : > { %v1620_v0 = vpop.permute.xlu0 %1619 }
  0xf9   : > { %v1622_v51 = vunpack.i.h.bf16 %v1620_v0  ;;  %v1621_v24 = vunpack.i.l.bf16 %v1620_v0  ;;  %v874_v10 = vsel %vm873_vm7, %v857_v18, %v1626_v21  ;;  %v875_v6 = vsel %vm873_vm7, %v858_v19, %v1627_v31 }
  0xfb   : > { %v937_v1 = vsel %vm924_vm10, %v920_v55, %v1621_v24  ;;  %v938_v4 = vsel %vm924_vm10, %v921_v47, %v1622_v51 }
  0xfc   : > { %v947_v58 = vpack.c.bf16 %v938_v4, %v937_v1  ;;  %v1582_v1 = vunpack.i.h.bf16 %v2312_v36  ;;  %v1581_v4 = vunpack.i.l.bf16 %v2312_v36 }
  0xfd   : > { %v1690_v55 = vpop.permute.xlu2 %1689 }
  0xfe   : > { %1317 = vmatmul.msk.bf16.vlgmr.msra.gmra.mxu3 %vm973_vm11, %v947_v58  ;;  %v1640_v15 = vpop.permute.xlu1 %1639  ;;  %v1692_v18 = vunpack.i.h.bf16 %v1690_v55  ;;  %v1691_v19 = vunpack.i.l.bf16 %v1690_v55 }
  0xff   : > { %v1642_v33 = vunpack.i.h.bf16 %v1640_v15  ;;  %v1641_v8 = vunpack.i.l.bf16 %v1640_v15 }
 0x100   : > { %v1635_v29 = vpop.permute.xlu0 %1634 }
 0x101   : > { %v1637_v43 = vunpack.i.h.bf16 %v1635_v29  ;;  %v1636_v11 = vunpack.i.l.bf16 %v1635_v29  ;;  %v895_v37 = vsel %vm890_vm8, %v878_v9, %v1641_v8  ;;  %v896_v40 = vsel %vm890_vm8, %v879_v44, %v1642_v33 }
 0x102   : > { %v871_v29 = vsel %vm856_vm6, %v2254_v61, %v1581_v4 }
 0x103   : > { %v891_v46 = vsel %vm890_vm8, %v874_v10, %v1636_v11  ;;  %v892_v42 = vsel %vm890_vm8, %v875_v6, %v1637_v43  ;;  %v872_v43 = vsel %vm856_vm6, %v2257_v62, %v1582_v1  ;;  %v1677_v11 = vunpack.i.h.bf16 %v1675_v30 }
 0x104   : > { %v908_v49 = vsel %vm907_vm9, %v891_v46, %v1646_v20  ;;  %v909_v12 = vsel %vm907_vm9, %v892_v42, %v1647_v23 }
 0x105   : > { %v1705_v56 = vpop.permute.xlu2 %1704 }
 0x106   : > { %v1655_v35 = vpop.permute.xlu1 %1654 }
 0x107   : > { %v1657_v54 = vunpack.i.h.bf16 %v1655_v35  ;;  %v1656_v45 = vunpack.i.l.bf16 %v1655_v35 }
 0x108   : > { %v1650_v63 = vpop.permute.xlu0 %1649 }
 0x109   : > { %v1652_v48 = vunpack.i.h.bf16 %v1650_v63  ;;  %v1651_v59 = vunpack.i.l.bf16 %v1650_v63  ;;  %v925_v7 = vsel %vm924_vm10, %v908_v49, %v1656_v45  ;;  %v926_v32 = vsel %vm924_vm10, %v909_v12, %v1657_v54 }
 0x10a   : > { %v941_v52 = vpack.c.bf16 %v926_v32, %v925_v7  ;;  %v1706_v7 = vunpack.i.l.bf16 %v1705_v56 }
 0x10b   : > { %v912_v34 = vsel %vm907_vm9, %v895_v37, %v1651_v59  ;;  %v913_v39 = vsel %vm907_vm9, %v896_v40, %v1652_v48  ;;  %v1707_v59 = vunpack.i.h.bf16 %v1705_v56 }
 0x10c   : > { %1311 = vmatmul.msk.bf16.vlgmr.msra.gmra.mxu0 %vm973_vm11, %v941_v52  ;;  %v929_v0 = vsel %vm924_vm10, %v912_v34, %v1661_v26  ;;  %v930_v2 = vsel %vm924_vm10, %v913_v39, %v1662_v50 }
 0x10d   : > { %v943_v53 = vpack.c.bf16 %v930_v2, %v929_v0  ;;  %v1720_v63 = vpop.permute.xlu2 %1719  ;;  %v876_v0 = vsel %vm873_vm7, %v2295_v38, %v1706_v7  ;;  %v877_v2 = vsel %vm873_vm7, %v2299_v16, %v1707_v59 }
 0x10e   : > { %v1670_v51 = vpop.permute.xlu1 %1669 }
 0x10f   : > { %1313 = vmatmul.msk.bf16.vlgmr.msra.gmra.mxu1 %vm973_vm11, %v943_v53  ;;  %v1672_v58 = vunpack.i.h.bf16 %v1670_v51  ;;  %v1671_v3 = vunpack.i.l.bf16 %v1670_v51 }
 0x110   : > { %v1665_v24 = vpop.permute.xlu0 %1664 }
 0x111   : > { %v1667_v28 = vunpack.i.h.bf16 %v1665_v24  ;;  %v1666_v13 = vunpack.i.l.bf16 %v1665_v24  ;;  %v888_v36 = vsel %vm873_vm7, %v871_v29, %v1671_v3  ;;  %v889_v17 = vsel %vm873_vm7, %v872_v43, %v1672_v58 }
 0x113   : > { %v884_v5 = vsel %vm873_vm7, %v2283_v22, %v1666_v13  ;;  %v885_v23 = vsel %vm873_vm7, %v2286_v25, %v1667_v28  ;;  %v1722_v28 = vunpack.i.h.bf16 %v1720_v63  ;;  %v1721_v13 = vunpack.i.l.bf16 %v1720_v63 }
 0x114   : > { %v901_v57 = vsel %vm890_vm8, %v884_v5, %v1676_v14  ;;  %v902_v60 = vsel %vm890_vm8, %v885_v23, %v1677_v11  ;;  %v2451_v23 = vld [vmem:[%s2593_s2] ss:$0 sm:$0xff] }
 0x115   : > { %v1735_v32 = vpop.permute.xlu2 %1734 }
 0x116   : > { %v1685_v47 = vpop.permute.xlu1 %1684  ;;  %v1737_v34 = vunpack.i.h.bf16 %v1735_v32  ;;  %v1736_v39 = vunpack.i.l.bf16 %v1735_v32 }
 0x117   : > { %v1687_v62 = vunpack.i.h.bf16 %v1685_v47  ;;  %v1686_v10 = vunpack.i.l.bf16 %v1685_v47 }
 0x118   : > { %v1680_v15 = vpop.permute.xlu0 %1679 }
 0x119   : > { %v1682_v31 = vunpack.i.h.bf16 %v1680_v15  ;;  %v1681_v21 = vunpack.i.l.bf16 %v1680_v15  ;;  %v918_v30 = vsel %vm907_vm9, %v901_v57, %v1686_v10  ;;  %v919_v54 = vsel %vm907_vm9, %v902_v60, %v1687_v62 }
 0x11b   : > { %v905_v61 = vsel %vm890_vm8, %v888_v36, %v1681_v21  ;;  %v906_v20 = vsel %vm890_vm8, %v889_v17, %v1682_v31 }
 0x11c   : > { %v922_v8 = vsel %vm907_vm9, %v905_v61, %v1691_v19  ;;  %v923_v22 = vsel %vm907_vm9, %v906_v20, %v1692_v18  ;;  %v2453_v20 = vstv %s1051_s24 }
 0x11e   : > { %v1700_v6 = vpop.permute.xlu1 %1699 }
 0x11f   : > { %v1702_v46 = vunpack.i.h.bf16 %v1700_v6  ;;  %v1701_v42 = vunpack.i.l.bf16 %v1700_v6 }
 0x120   : > { %v1695_v33 = vpop.permute.xlu0 %1694 }
 0x121   : > { %v1697_v35 = vunpack.i.h.bf16 %v1695_v33  ;;  %v1696_v25 = vunpack.i.l.bf16 %v1695_v33  ;;  %v939_v9 = vsel %vm924_vm10, %v922_v8, %v1701_v42  ;;  %v940_v44 = vsel %vm924_vm10, %v923_v22, %v1702_v46 }
 0x122   : > { %v948_v45 = vpack.c.bf16 %v940_v44, %v939_v9 }
 0x123   : > { %v935_v50 = vsel %vm924_vm10, %v918_v30, %v1696_v25  ;;  %v936_v26 = vsel %vm924_vm10, %v919_v54, %v1697_v35 }
 0x124   : > { %v946_v49 = vpack.c.bf16 %v936_v26, %v935_v50  ;;  %1318 = vmatmul.msk.bf16.gmra.mxu3 %vm973_vm11, %v948_v45 }
 0x126   : > { %1316 = vmatmul.msk.bf16.gmra.mxu2 %vm973_vm11, %v946_v49  ;;  %v1715_v48 = vpop.permute.xlu1 %1714 }
 0x127   : > { %v1717_v37 = vunpack.i.h.bf16 %v1715_v48  ;;  %v1716_v40 = vunpack.i.l.bf16 %v1715_v48 }
 0x128   : > { %v1710_v12 = vpop.permute.xlu0 %1709 }
 0x129   : > { %v893_v24 = vsel %vm890_vm8, %v876_v0, %v1716_v40  ;;  %v894_v55 = vsel %vm890_vm8, %v877_v2, %v1717_v37  ;;  %v1712_v47 = vunpack.i.h.bf16 %v1710_v12  ;;  %v1711_v1 = vunpack.i.l.bf16 %v1710_v12 }
 0x12b   : > { %v880_v31 = vsel %vm873_vm7, %v2310_v27, %v1711_v1  ;;  %v881_v21 = vsel %vm873_vm7, %v2307_v41, %v1712_v47 }
 0x12c   : > { %v897_v14 = vsel %vm890_vm8, %v880_v31, %v1721_v13  ;;  %v898_v56 = vsel %vm890_vm8, %v881_v21, %v1722_v28 }
 0x12e   : > { %v1730_v4 = vpop.permute.xlu1 %1729 }
 0x12f   : > { %v1732_v29 = vunpack.i.h.bf16 %v1730_v4  ;;  %v1731_v43 = vunpack.i.l.bf16 %v1730_v4 }
 0x130   : > { %v1725_v52 = vpop.permute.xlu0 %1724 }
 0x131   : > { %v1727_v53 = vunpack.i.h.bf16 %v1725_v52  ;;  %v1726_v51 = vunpack.i.l.bf16 %v1725_v52  ;;  %v914_v36 = vsel %vm907_vm9, %v897_v14, %v1731_v43  ;;  %v915_v27 = vsel %vm907_vm9, %v898_v56, %v1732_v29 }
 0x133   : > { %v910_v58 = vsel %vm907_vm9, %v893_v24, %v1726_v51  ;;  %v911_v3 = vsel %vm907_vm9, %v894_v55, %v1727_v53 }
 0x134   : > { %v927_v15 = vsel %vm924_vm10, %v910_v58, %v1736_v39  ;;  %v928_v38 = vsel %vm924_vm10, %v911_v3, %v1737_v34 }
 0x135   : > { %v942_v16 = vpack.c.bf16 %v928_v38, %v927_v15 }
 0x137   : > { %1312 = vmatmul.msk.bf16.gmra.mxu0 %vm973_vm11, %v942_v16 }
 0x138   : > { %v1740_v11 = vpop.permute.xlu0 %1739 }
 0x139   : > { %v1742_v18 = vunpack.i.h.bf16 %v1740_v11  ;;  %v1741_v19 = vunpack.i.l.bf16 %v1740_v11 }
 0x13b   : > { %v931_v17 = vsel %vm924_vm10, %v914_v36, %v1741_v19  ;;  %v932_v41 = vsel %vm924_vm10, %v915_v27, %v1742_v18 }
 0x13c   : > { %v944_v5 = vpack.c.bf16 %v932_v41, %v931_v17 }
 0x13e   : > { %1314 = vmatmul.msk.bf16.gmra.mxu1 %vm973_vm11, %v944_v5 }
 0x17a   : > { %v1031_v61 = vpop.f32.mrf.mxu2 }
 0x17b   : > { %v1032_v62 = vadd.f32 %v2451_v23, %v1031_v61 }
 0x17d   : > { %v1077_v10 = vmul.f32 %v2453_v20, %v1032_v62  ;;  %vm1060_vm12 = vcmp.gt.f32.partialorder %v1032_v62, 0.0 }
 0x17f   : > { %v1093_v6 = vsel %vm1060_vm12, %v1032_v62, %v1077_v10 }
 0x180   : > { %1149 = vrot.lane.b32.xlu0 %v1093_v6, %s1792_s18  ;;  %1109 = vst.msk [vmem:[%s2459_s17 + $0x80] sm:$0xff] %vm822_vm3, %v1093_v6 }
 0x181   : > { %v1041_v46 = vpop.f32.mrf.mxu3 }
 0x182   : > { %v1042_v42 = vadd.f32 %v2451_v23, %v1041_v46  ;;  %v1033_v57 = vpop.f32.mrf.mxu2 }
 0x183   : > { %v1034_v60 = vadd.f32 %v2451_v23, %v1033_v57 }
 0x184   : > { %v1081_v33 = vmul.f32 %v2453_v20, %v1042_v42  ;;  %vm1064_vm13 = vcmp.gt.f32.partialorder %v1042_v42, 0.0 }
 0x185   : > { %v1078_v8 = vmul.f32 %v2453_v20, %v1034_v60  ;;  %vm1061_vm14 = vcmp.gt.f32.partialorder %v1034_v60, 0.0 }
 0x186   : > { %v1097_v22 = vsel %vm1064_vm13, %v1042_v42, %v1081_v33 }
 0x187   : > { %1113 = vst.msk [vmem:[%s2459_s17 + $0xc0] sm:$0xff] %vm822_vm3, %v1097_v22  ;;  %v1094_v35 = vsel %vm1061_vm14, %v1034_v60, %v1078_v8 }
 0x188   : > { %1110 = vst.msk [vmem:[%s2459_s17 + $0x88] sm:$0xff] %vm822_vm3, %v1094_v35 }
 0x189   : > { %v1043_v25 = vpop.f32.mrf.mxu3  ;;  %v1011_v9 = vpop.f32.mrf.mxu0 }
 0x18a   : > { %v1044_v44 = vadd.f32 %v2451_v23, %v1043_v25  ;;  %v1012_v30 = vadd.f32 %v2451_v23, %v1011_v9 }
 0x18c   : > { %v1082_v54 = vmul.f32 %v2453_v20, %v1044_v44  ;;  %v1069_v45 = vmul.f32 %v2453_v20, %v1012_v30  ;;  %v1021_v50 = vpop.f32.mrf.mxu1  ;;  %vm1052_vm15 = vcmp.gt.f32.partialorder %v1012_v30, 0.0  ;;  %vm1065_vm0 = vcmp.gt.f32.partialorder %v1044_v44, 0.0 }
 0x18d   : > { %v1022_v26 = vadd.f32 %v2451_v23, %v1021_v50 }
 0x18e   : > { %v1085_v63 = vsel %vm1052_vm15, %v1012_v30, %v1069_v45  ;;  %v2478_v49 = vsel %vm1065_vm0, %v1044_v44, %v1082_v54 }
 0x18f   : > { %v1073_v12 = vmul.f32 %v2453_v20, %v1022_v26  ;;  %1133 = vrot.lane.b32.xlu1 %v1085_v63, %s1792_s18  ;;  %1101 = vst.msk [vmem:[%s2459_s17] sm:$0xff] %vm822_vm3, %v1085_v63  ;;  %vm1056_vm1 = vcmp.gt.f32.partialorder %v1022_v26, 0.0 }
 0x190   : > { %1114 = vst.msk [vmem:[%s2459_s17 + $0xc8] sm:$0xff] %vm822_vm3, %v2478_v49 }
 0x191   : > { %v1089_v48 = vsel %vm1056_vm1, %v1022_v26, %v1073_v12  ;;  %v1013_v59 = vpop.f32.mrf.mxu0 }
 0x192   : > { %1141 = vrot.lane.b32.xlu2 %v1089_v48, %s1792_s18  ;;  %1105 = vst.msk [vmem:[%s2459_s17 + $0x40] sm:$0xff] %vm822_vm3, %v1089_v48  ;;  %v1014_v7 = vadd.f32 %v2451_v23, %v1013_v59 }
 0x194   : > { %v1070_v32 = vmul.f32 %v2453_v20, %v1014_v7  ;;  %v1023_v37 = vpop.f32.mrf.mxu1  ;;  %vm1053_vm2 = vcmp.gt.f32.partialorder %v1014_v7, 0.0 }
 0x195   : > { %v1024_v40 = vadd.f32 %v2451_v23, %v1023_v37 }
 0x196   : > { %v1086_v52 = vsel %vm1053_vm2, %v1014_v7, %v1070_v32 }
 0x197   : > { %v1074_v34 = vmul.f32 %v2453_v20, %v1024_v40  ;;  %1157 = vrot.lane.b32.xlu1 %v1097_v22, %s1792_s18  ;;  %vm1057_vm4 = vcmp.gt.f32.partialorder %v1024_v40, 0.0  ;;  %1102 = vst.msk [vmem:[%s2459_s17 + $0x8] sm:$0xff] %vm822_vm3, %v1086_v52 }
 0x199   : > { %v1090_v39 = vsel %vm1057_vm4, %v1024_v40, %v1074_v34 }
 0x19a   : > { %1106 = vst.msk [vmem:[%s2459_s17 + $0x48] sm:$0xff] %vm822_vm3, %v1090_v39  ;;  %1143 = vrot.lane.b32.xlu0 %v1090_v39, %s1792_s18  ;;  %1135 = vrot.lane.b32.xlu2 %v1086_v52, %s1792_s18 }
 0x19f   : > { %1151 = vrot.lane.b32.xlu1 %v1094_v35, %s1792_s18 }
 0x1a7   : > { %v1046_v0 = vpop.f32.mrf.mxu3 }
 0x1a8   : > { %v1047_v2 = vadd.f32 %v2451_v23, %v1046_v0 }
 0x1a9   : > { %v1036_v53 = vpop.f32.mrf.mxu2 }
 0x1aa   : > { %v1037_v51 = vadd.f32 %v2451_v23, %v1036_v53  ;;  %v1083_v24 = vmul.f32 %v2453_v20, %v1047_v2  ;;  %vm1066_vm5 = vcmp.gt.f32.partialorder %v1047_v2, 0.0 }
 0x1ac   : > { %v1079_v55 = vmul.f32 %v2453_v20, %v1037_v51  ;;  %vm1062_vm6 = vcmp.gt.f32.partialorder %v1037_v51, 0.0  ;;  %v1099_v47 = vsel %vm1066_vm5, %v1047_v2, %v1083_v24 }
 0x1ad   : > { %1115 = vst.msk [vmem:[%s2459_s17 + $0xe0] sm:$0xff] %vm822_vm3, %v1099_v47 }
 0x1ae   : > { %v1095_v1 = vsel %vm1062_vm6, %v1037_v51, %v1079_v55 }
 0x1af   : > { %1111 = vst.msk [vmem:[%s2459_s17 + $0xa0] sm:$0xff] %vm822_vm3, %v1095_v1  ;;  %1153 = vrot.lane.b32.xlu2 %v1095_v1, %s1792_s18  ;;  %v1048_v4 = vpop.f32.mrf.mxu3 }
 0x1b0   : > { %v1049_v58 = vadd.f32 %v2451_v23, %v1048_v4 }
 0x1b1   : > { %v1038_v3 = vpop.f32.mrf.mxu2 }
 0x1b2   : > { %v1039_v15 = vadd.f32 %v2451_v23, %v1038_v3  ;;  %v1084_v38 = vmul.f32 %v2453_v20, %v1049_v58  ;;  %vm1067_vm7 = vcmp.gt.f32.partialorder %v1049_v58, 0.0 }
 0x1b4   : > { %v1080_v28 = vmul.f32 %v2453_v20, %v1039_v15  ;;  %v1016_v13 = vpop.f32.mrf.mxu0  ;;  %vm1063_vm8 = vcmp.gt.f32.partialorder %v1039_v15, 0.0  ;;  %v1100_v16 = vsel %vm1067_vm7, %v1049_v58, %v1084_v38 }
 0x1b5   : > { %v1017_v31 = vadd.f32 %v2451_v23, %v1016_v13  ;;  %1116 = vst.msk [vmem:[%s2459_s17 + $0xe8] sm:$0xff] %vm822_vm3, %v1100_v16 }
 0x1b6   : > { %v1096_v21 = vsel %vm1063_vm8, %v1039_v15, %v1080_v28 }
 0x1b7   : > { %v1071_v29 = vmul.f32 %v2453_v20, %v1017_v31  ;;  %vm1054_vm9 = vcmp.gt.f32.partialorder %v1017_v31, 0.0  ;;  %1112 = vst.msk [vmem:[%s2459_s17 + $0xa8] sm:$0xff] %vm822_vm3, %v1096_v21 }
 0x1b9   : > { %v1087_v43 = vsel %vm1054_vm9, %v1017_v31, %v1071_v29 }
 0x1ba   : > { %1137 = vrot.lane.b32.xlu0 %v1087_v43, %s1792_s18  ;;  %1103 = vst.msk [vmem:[%s2459_s17 + $0x20] sm:$0xff] %vm822_vm3, %v1087_v43 }
 0x1bb   : > { %v1026_v11 = vpop.f32.mrf.mxu1 }
 0x1bc   : > { %v1027_v14 = vadd.f32 %v2451_v23, %v1026_v11  ;;  %v1018_v56 = vpop.f32.mrf.mxu0 }
 0x1bd   : > { %v1019_v18 = vadd.f32 %v2451_v23, %v1018_v56 }
 0x1be   : > { %v1075_v19 = vmul.f32 %v2453_v20, %v1027_v14  ;;  %vm1058_vm10 = vcmp.gt.f32.partialorder %v1027_v14, 0.0 }
 0x1bf   : > { %v1072_v36 = vmul.f32 %v2453_v20, %v1019_v18  ;;  %vm1055_vm11 = vcmp.gt.f32.partialorder %v1019_v18, 0.0 }
 0x1c0   : > { %v1091_v27 = vsel %vm1058_vm10, %v1027_v14, %v1075_v19 }
 0x1c1   : > { %1107 = vst.msk [vmem:[%s2459_s17 + $0x60] sm:$0xff] %vm822_vm3, %v1091_v27  ;;  %1145 = vrot.lane.b32.xlu1 %v1091_v27, %s1792_s18  ;;  %v1088_v17 = vsel %vm1055_vm11, %v1019_v18, %v1072_v36 }
 0x1c2   : > { %1155 = vrot.lane.b32.xlu0 %v1096_v21, %s1792_s18  ;;  %1104 = vst.msk [vmem:[%s2459_s17 + $0x28] sm:$0xff] %vm822_vm3, %v1088_v17 }
 0x1c3   : > { %v1028_v41 = vpop.f32.mrf.mxu1 }
 0x1c4   : > { %v1029_v5 = vadd.f32 %v2451_v23, %v1028_v41 }
 0x1c6   : > { %v1076_v61 = vmul.f32 %v2453_v20, %v1029_v5  ;;  %vm1059_vm12 = vcmp.gt.f32.partialorder %v1029_v5, 0.0 }
 0x1c8   : > { %v1092_v62 = vsel %vm1059_vm12, %v1029_v5, %v1076_v61 }
 0x1c9   : > { %1108 = vst.msk [vmem:[%s2459_s17 + $0x68] sm:$0xff] %vm822_vm3, %v1092_v62  ;;  %1147 = vrot.lane.b32.xlu2 %v1092_v62, %s1792_s18  ;;  %1139 = vrot.lane.b32.xlu1 %v1088_v17, %s1792_s18 }
 0x1ca   : > { %1161 = vrot.lane.b32.xlu0 %v1099_v47, %s1792_s18 }
 0x1d1   : > { %1159 = vrot.lane.b32.xlu2 %v2478_v49, %s1792_s18  ;;  %1163 = vrot.lane.b32.xlu1 %v1100_v16, %s1792_s18 }
 0x1ec   : > { %v1142_v23 = vpop.permute.xlu2 %1141 }
 0x1ed   : > { %1323 = vst.msk [vmem:[%s2459_s17 + $0x50] sm:$0xff] %vm822_vm3, %v1142_v23 }
 0x1f2   : > { %v1150_v20 = vpop.permute.xlu0 %1149 }
 0x1f3   : > { %1327 = vst.msk [vmem:[%s2459_s17 + $0x90] sm:$0xff] %vm822_vm3, %v1150_v20 }
 0x1f4   : > { %v1136_v10 = vpop.permute.xlu2 %1135 }
 0x1f5   : > { %1320 = vst.msk [vmem:[%s2459_s17 + $0x18] sm:$0xff] %vm822_vm3, %v1136_v10 }
 0x201   : > { %v1134_v6 = vpop.permute.xlu1 %1133 }
 0x202   : > { %1319 = vst.msk [vmem:[%s2459_s17 + $0x10] sm:$0xff] %vm822_vm3, %v1134_v6 }
 0x209   : > { %v1154_v46 = vpop.permute.xlu2 %1153  ;;  %v1158_v42 = vpop.permute.xlu1 %1157 }
 0x20a   : > { %1329 = vst.msk [vmem:[%s2459_s17 + $0xb0] sm:$0xff] %vm822_vm3, %v1154_v46 }
 0x20b   : > { %1331 = vst.msk [vmem:[%s2459_s17 + $0xd0] sm:$0xff] %vm822_vm3, %v1158_v42 }
 0x20c   : > { %v1144_v57 = vpop.permute.xlu0 %1143 }
 0x20d   : > { %1324 = vst.msk [vmem:[%s2459_s17 + $0x58] sm:$0xff] %vm822_vm3, %v1144_v57 }
 0x211   : > { %v1152_v60 = vpop.permute.xlu1 %1151 }
 0x212   : > { %1328 = vst.msk [vmem:[%s2459_s17 + $0x98] sm:$0xff] %vm822_vm3, %v1152_v60 }
 0x223   : > { %v1148_v33 = vpop.permute.xlu2 %1147 }
 0x224   : > { %1326 = vst.msk [vmem:[%s2459_s17 + $0x78] sm:$0xff] %vm822_vm3, %v1148_v33 }
 0x22b   : > { %v1160_v8 = vpop.permute.xlu2 %1159 }
 0x22c   : > { %1332 = vst.msk [vmem:[%s2459_s17 + $0xd8] sm:$0xff] %vm822_vm3, %v1160_v8  ;;  %v1138_v22 = vpop.permute.xlu0 %1137 }
 0x22d   : > { %1321 = vst.msk [vmem:[%s2459_s17 + $0x30] sm:$0xff] %vm822_vm3, %v1138_v22 }
 0x233   : > { %v1146_v35 = vpop.permute.xlu1 %1145 }
 0x234   : > { %1325 = vst.msk [vmem:[%s2459_s17 + $0x70] sm:$0xff] %vm822_vm3, %v1146_v35  ;;  %v1156_v25 = vpop.permute.xlu0 %1155 }
 0x235   : > { %1330 = vst.msk [vmem:[%s2459_s17 + $0xb8] sm:$0xff] %vm822_vm3, %v1156_v25 }
 0x23b   : > { %v1140_v9 = vpop.permute.xlu1 %1139 }
 0x23c   : > { %1322 = vst.msk [vmem:[%s2459_s17 + $0x38] sm:$0xff] %vm822_vm3, %v1140_v9  ;;  %v1162_v44 = vpop.permute.xlu0 %1161 }
 0x23d   : > { %1333 = vst.msk [vmem:[%s2459_s17 + $0xf0] sm:$0xff] %vm822_vm3, %v1162_v44 }
 0x243   : > { %v1164_v30 = vpop.permute.xlu1 %1163 }
 0x244   : > { %1334 = vst.msk [vmem:[%s2459_s17 + $0xf8] sm:$0xff] %vm822_vm3, %v1164_v30 }
 0x245 PF: > { %s15_s21 = sadd.s32 1, %s1782_s21   ;;  %s2596_s17 = smov %s1774_s19 }
 0x246   : > { %p12_p7 = scmp.ge.s32.totalorder %s15_s21, 6   ;;  %s2597_s18 = smov %s1778_s20 }
 0x247   : > { %s2598_s19 = smov %s2601_s3  ;;  %s2599_s20 = smov %s2605_s22 }
 0x248   :  { %14 = sbr.rel (!%p12_p7) target bundleno = 3 (0x3), region = 68 }

</bundles_post_ra>
